<compile_context>
chip_gen: v7x
topology: tpu7x:2x2x1
jax: 0.10.0
libtpu: 0.0.40
codegen_flags: <defaults>
</compile_context>

<pallas_src>
import jax
import jax.numpy as jnp
from jax.experimental import pallas as pl
from jax.experimental.pallas import tpu as pltpu


def _round_up(x, m):
    return ((x + m - 1) // m) * m


def _leaky_relu(y, negative_slope=0.01):
    # max(y, a*y) == leaky_relu(y) for 0 < a < 1 (torch default a=0.01).
    return jnp.maximum(y, negative_slope * y)


def value_net_kernel(x_ref, w1_ref, b1_ref, w2_ref, b2_ref, w3_ref, b3_ref,
                     out_ref):
    x = x_ref[...]

    # layer 1: Linear(state_dim -> hidden) + leaky_relu
    h = jnp.dot(x, w1_ref[...], preferred_element_type=jnp.float32)
    h = _leaky_relu(h + b1_ref[...])          # b1 is (1, H) -> broadcasts

    # layer 2: Linear(hidden -> hidden) + leaky_relu
    h = jnp.dot(h, w2_ref[...], preferred_element_type=jnp.float32)
    h = _leaky_relu(h + b2_ref[...])

    # layer 3: Linear(hidden -> 1), no activation (value head).
    # Output is lane-padded to 128; padded columns are exact zeros.
    v = jnp.dot(h, w3_ref[...], preferred_element_type=jnp.float32)
    out_ref[...] = (v + b3_ref[...]).astype(out_ref.dtype)


def value_net_forward(x, params, *, block_m=512):
    """x: (B, state_dim) f32. params: dict with w1,b1,w2,b2,w3,b3.

    Weights stored as (in_features, out_features), so y = x @ W + b
    (numerically identical to PyTorch's x @ W.T with W of shape (out, in)).
    """
    w1, b1 = params["w1"], params["b1"]
    w2, b2 = params["w2"], params["b2"]
    w3, b3 = params["w3"], params["b3"]

    B, state_dim = x.shape
    hidden = w1.shape[1]
    out_dim = w3.shape[1]                     # 1 for ValueNet

    # ---- pad feature dims to lane-friendly sizes (exact, zero padding) ----
    h_pad = _round_up(hidden, 128)
    o_pad = _round_up(out_dim, 128)           # lane-dense output slab

    w1p = jnp.pad(w1, ((0, 0), (0, h_pad - hidden)))
    b1p = jnp.pad(b1.reshape(1, -1), ((0, 0), (0, h_pad - hidden)))
    w2p = jnp.pad(w2, ((0, h_pad - hidden), (0, h_pad - hidden)))
    b2p = jnp.pad(b2.reshape(1, -1), ((0, 0), (0, h_pad - hidden)))
    w3p = jnp.pad(w3, ((0, h_pad - hidden), (0, o_pad - out_dim)))
    b3p = jnp.pad(b3.reshape(1, -1), ((0, 0), (0, o_pad - out_dim)))

    # ---- tile the batch axis with minimal padding ----
    b8 = _round_up(B, 8)                      # sublane-aligned batch
    if b8 <= block_m:
        tm = b8                               # single tile, no extra padding
        b_pad = b8
    else:
        tm = block_m
        b_pad = _round_up(B, tm)
    xp = jnp.pad(x, ((0, b_pad - B), (0, 0))) if b_pad != B else x

    grid = (b_pad // tm,)

    out = pl.pallas_call(
        value_net_kernel,
        out_shape=jax.ShapeDtypeStruct((b_pad, o_pad), jnp.float32),
        grid=grid,
        in_specs=[
            # activations: tiled over the batch axis
            pl.BlockSpec((tm, state_dim), lambda i: (i, 0)),
            # weights / biases: single block, resident across all grid steps
            pl.BlockSpec((state_dim, h_pad), lambda i: (0, 0)),
            pl.BlockSpec((1, h_pad), lambda i: (0, 0)),
            pl.BlockSpec((h_pad, h_pad), lambda i: (0, 0)),
            pl.BlockSpec((1, h_pad), lambda i: (0, 0)),
            pl.BlockSpec((h_pad, o_pad), lambda i: (0, 0)),
            pl.BlockSpec((1, o_pad), lambda i: (0, 0)),
        ],
        out_specs=pl.BlockSpec((tm, o_pad), lambda i: (i, 0)),
        compiler_params=pltpu.CompilerParams(
            dimension_semantics=("parallel",)),
    )(xp, w1p, b1p, w2p, b2p, w3p, b3p)

    # slice away batch padding and the lane padding of the value head
    return out[:B, :out_dim]


def init_params(key, state_dim, hidden_dim):
    # TODO(synk): the original applies a custom weights_init (not shown in the
    # spec); deterministic scaled normals with matching shapes are used here.
    k1, k2, k3, k4, k5, k6 = jax.random.split(key, 6)
    scale = 0.1
    return {
        "w1": scale * jax.random.normal(k1, (state_dim, hidden_dim), jnp.float32),
        "b1": scale * jax.random.normal(k2, (hidden_dim,), jnp.float32),
        "w2": scale * jax.random.normal(k3, (hidden_dim, hidden_dim), jnp.float32),
        "b2": scale * jax.random.normal(k4, (hidden_dim,), jnp.float32),
        "w3": scale * jax.random.normal(k5, (hidden_dim, 1), jnp.float32),
        "b3": scale * jax.random.normal(k6, (1,), jnp.float32),
    }


def reference_forward(x, params):
    def lrelu(v):
        return jnp.where(v >= 0, v, 0.01 * v)
    h1 = lrelu(x @ params["w1"] + params["b1"])
    h2 = lrelu(h1 @ params["w2"] + params["b2"])
    return h2 @ params["w3"] + params["b3"]      # no tanh: value head


if __name__ == "__main__":
    key = jax.random.PRNGKey(0)
    kx, kp, kx2 = jax.random.split(key, 3)

    batch = 8
    state_dim = 16
    hidden_dim = 32

    params = init_params(kp, state_dim, hidden_dim)

    # small single-tile case
    x = jax.random.normal(kx, (batch, state_dim), jnp.float32)
    out = jax.block_until_ready(value_net_forward(x, params))
    ref = reference_forward(x, params)
    assert out.shape == (batch, 1)
    assert jnp.allclose(out, ref, atol=1e-5, rtol=1e-5)

    # multi-tile case: exercises the batch grid, batch padding, and the
    # resident-weight BlockSpecs (grid = 3 tiles of 8 rows).
    x2 = jax.random.normal(kx2, (20, state_dim), jnp.float32)
    out2 = jax.block_until_ready(value_net_forward(x2, params, block_m=8))
    ref2 = reference_forward(x2, params)
    assert out2.shape == (20, 1)
    assert jnp.allclose(out2, ref2, atol=1e-5, rtol=1e-5)

    print("KERNEL_OK")
</pallas_src>

<mosaic_0001>
module attributes {stable_mosaic.version = 11 : i64} {
  func.func @value_net_kernel(%arg0: i32, %arg1: memref<8x16xf32, #tpu.memory_space<vmem>>, %arg2: memref<16x128xf32, #tpu.memory_space<vmem>>, %arg3: memref<1x128xf32, #tpu.memory_space<vmem>>, %arg4: memref<128x128xf32, #tpu.memory_space<vmem>>, %arg5: memref<1x128xf32, #tpu.memory_space<vmem>>, %arg6: memref<128x128xf32, #tpu.memory_space<vmem>>, %arg7: memref<1x128xf32, #tpu.memory_space<vmem>>, %arg8: memref<8x128xf32, #tpu.memory_space<vmem>>) attributes {dimension_semantics = [#tpu.dimension_semantics<parallel>], iteration_bounds = array<i64: 1>, scalar_prefetch = 0 : i64, scratch_operands = 0 : i64, tpu.core_type = #tpu.core_type<tc>, window_params = [{transform_indices = @transform_0, window_bounds = array<i64: 8, 16>}, {pipeline_mode = #tpu.pipeline_mode<synchronous>, transform_indices = @transform_1, window_bounds = array<i64: 16, 128>}, {pipeline_mode = #tpu.pipeline_mode<synchronous>, transform_indices = @transform_2, window_bounds = array<i64: 1, 128>}, {pipeline_mode = #tpu.pipeline_mode<synchronous>, transform_indices = @transform_3, window_bounds = array<i64: 128, 128>}, {pipeline_mode = #tpu.pipeline_mode<synchronous>, transform_indices = @transform_4, window_bounds = array<i64: 1, 128>}, {pipeline_mode = #tpu.pipeline_mode<synchronous>, transform_indices = @transform_5, window_bounds = array<i64: 128, 128>}, {pipeline_mode = #tpu.pipeline_mode<synchronous>, transform_indices = @transform_6, window_bounds = array<i64: 1, 128>}, {transform_indices = @transform_7, window_bounds = array<i64: 8, 128>}]} {
    %c0 = arith.constant 0 : index
    %c0_0 = arith.constant 0 : index
    %0 = vector.load %arg1[%c0, %c0_0] : memref<8x16xf32, #tpu.memory_space<vmem>>, vector<8x16xf32>
    %c0_1 = arith.constant 0 : index
    %c0_2 = arith.constant 0 : index
    %1 = vector.load %arg2[%c0_1, %c0_2] : memref<16x128xf32, #tpu.memory_space<vmem>>, vector<16x128xf32>
    %cst = arith.constant dense<0.000000e+00> : vector<8x128xf32>
    %2 = tpu.matmul %0, %1, %cst {dimension_numbers = #tpu.dot_dimension_numbers<[1], [0], [0], [1], [0, 0, 1, 1], [], []>} : vector<8x16xf32>, vector<16x128xf32>, vector<8x128xf32> -> vector<8x128xf32>
    %c0_3 = arith.constant 0 : index
    %c0_4 = arith.constant 0 : index
    %3 = vector.load %arg3[%c0_3, %c0_4] : memref<1x128xf32, #tpu.memory_space<vmem>>, vector<1x128xf32>
    %4 = vector.broadcast %3 : vector<1x128xf32> to vector<8x128xf32>
    %5 = arith.addf %2, %4 : vector<8x128xf32>
    %cst_5 = arith.constant 0.00999999977 : f32
    %6 = vector.broadcast %cst_5 : f32 to vector<8x128xf32>
    %7 = arith.mulf %6, %5 : vector<8x128xf32>
    %8 = arith.maximumf %5, %7 : vector<8x128xf32>
    %c0_6 = arith.constant 0 : index
    %c0_7 = arith.constant 0 : index
    %9 = vector.load %arg4[%c0_6, %c0_7] : memref<128x128xf32, #tpu.memory_space<vmem>>, vector<128x128xf32>
    %cst_8 = arith.constant dense<0.000000e+00> : vector<8x128xf32>
    %10 = tpu.matmul %8, %9, %cst_8 {dimension_numbers = #tpu.dot_dimension_numbers<[1], [0], [0], [1], [0, 0, 1, 1], [], []>} : vector<8x128xf32>, vector<128x128xf32>, vector<8x128xf32> -> vector<8x128xf32>
    %c0_9 = arith.constant 0 : index
    %c0_10 = arith.constant 0 : index
    %11 = vector.load %arg5[%c0_9, %c0_10] : memref<1x128xf32, #tpu.memory_space<vmem>>, vector<1x128xf32>
    %12 = vector.broadcast %11 : vector<1x128xf32> to vector<8x128xf32>
    %13 = arith.addf %10, %12 : vector<8x128xf32>
    %cst_11 = arith.constant 0.00999999977 : f32
    %14 = vector.broadcast %cst_11 : f32 to vector<8x128xf32>
    %15 = arith.mulf %14, %13 : vector<8x128xf32>
    %16 = arith.maximumf %13, %15 : vector<8x128xf32>
    %c0_12 = arith.constant 0 : index
    %c0_13 = arith.constant 0 : index
    %17 = vector.load %arg6[%c0_12, %c0_13] : memref<128x128xf32, #tpu.memory_space<vmem>>, vector<128x128xf32>
    %cst_14 = arith.constant dense<0.000000e+00> : vector<8x128xf32>
    %18 = tpu.matmul %16, %17, %cst_14 {dimension_numbers = #tpu.dot_dimension_numbers<[1], [0], [0], [1], [0, 0, 1, 1], [], []>} : vector<8x128xf32>, vector<128x128xf32>, vector<8x128xf32> -> vector<8x128xf32>
    %c0_15 = arith.constant 0 : index
    %c0_16 = arith.constant 0 : index
    %19 = vector.load %arg7[%c0_15, %c0_16] : memref<1x128xf32, #tpu.memory_space<vmem>>, vector<1x128xf32>
    %20 = vector.broadcast %19 : vector<1x128xf32> to vector<8x128xf32>
    %21 = arith.addf %18, %20 : vector<8x128xf32>
    %c0_17 = arith.constant 0 : index
    %c0_18 = arith.constant 0 : index
    %22 = vector.load %arg8[%c0_17, %c0_18] : memref<8x128xf32, #tpu.memory_space<vmem>>, vector<8x128xf32>
    tpu.vector_store %arg8[%c0_17, %c0_18], %21 {strides = array<i32>} : memref<8x128xf32, #tpu.memory_space<vmem>>, vector<8x128xf32>,
    return
  }
  func.func @transform_0(%arg0: i32) -> (i32, i32) {
    %c0_i32 = arith.constant 0 : i32
    %c0_i32_0 = arith.constant 0 : i32
    return %arg0, %c0_i32 : i32, i32
  }
  func.func @transform_1(%arg0: i32) -> (i32, i32) {
    %c0_i32 = arith.constant 0 : i32
    %c0_i32_0 = arith.constant 0 : i32
    %c0_i32_1 = arith.constant 0 : i32
    return %c0_i32, %c0_i32_0 : i32, i32
  }
  func.func @transform_2(%arg0: i32) -> (i32, i32) {
    %c0_i32 = arith.constant 0 : i32
    %c0_i32_0 = arith.constant 0 : i32
    %c0_i32_1 = arith.constant 0 : i32
    return %c0_i32, %c0_i32_0 : i32, i32
  }
  func.func @transform_3(%arg0: i32) -> (i32, i32) {
    %c0_i32 = arith.constant 0 : i32
    %c0_i32_0 = arith.constant 0 : i32
    %c0_i32_1 = arith.constant 0 : i32
    return %c0_i32, %c0_i32_0 : i32, i32
  }
  func.func @transform_4(%arg0: i32) -> (i32, i32) {
    %c0_i32 = arith.constant 0 : i32
    %c0_i32_0 = arith.constant 0 : i32
    %c0_i32_1 = arith.constant 0 : i32
    return %c0_i32, %c0_i32_0 : i32, i32
  }
  func.func @transform_5(%arg0: i32) -> (i32, i32) {
    %c0_i32 = arith.constant 0 : i32
    %c0_i32_0 = arith.constant 0 : i32
    %c0_i32_1 = arith.constant 0 : i32
    return %c0_i32, %c0_i32_0 : i32, i32
  }
  func.func @transform_6(%arg0: i32) -> (i32, i32) {
    %c0_i32 = arith.constant 0 : i32
    %c0_i32_0 = arith.constant 0 : i32
    %c0_i32_1 = arith.constant 0 : i32
    return %c0_i32, %c0_i32_0 : i32, i32
  }
  func.func @transform_7(%arg0: i32) -> (i32, i32) {
    %c0_i32 = arith.constant 0 : i32
    %c0_i32_0 = arith.constant 0 : i32
    return %arg0, %c0_i32 : i32, i32
  }
}

</mosaic_0001>

<bundles_post_ra>
// kernel: tpu_custom_call.1
= control target key start
LH: loop header
LB: loop body
LE: loop exit
PB: predicated region body
PF: predicated region fallthrough
CT: control target
= control target key end

     0   :  { %12 = vsyncpa [#allocation3], 0  ;;  %s817_s0 = inlined_call_operand.hbm [shape: f32[8,16], index: 0, kind: input, shape index: {}]   ;;  %s818_s1 = inlined_call_operand.hbm [shape: f32[16,128], index: 1, kind: input, shape index: {}]   ;;  %s819_s2 = inlined_call_operand.vmem [shape: f32[1,128], index: 2, kind: input, shape index: {}]   ;;  %s820_s3 = inlined_call_operand.hbm [shape: f32[128,128], index: 3, kind: input, shape index: {}]   ;;  %s821_s4 = inlined_call_operand.vmem [shape: f32[1,128], index: 4, kind: input, shape index: {}]   ;;  %s822_s5 = inlined_call_operand.hbm [shape: f32[128,128], index: 5, kind: input, shape index: {}]   ;;  %s823_s6 = inlined_call_operand.vmem [shape: f32[1,128], index: 6, kind: input, shape index: {}]   ;;  %s824_s7 = inlined_call_operand.hbm [shape: f32[8,128], index: 7, kind: output, shape index: {}]  }
   0x1   :  { %13 = vsyncpa [#allocation6], 0 }
   0x2   :  { %14 = vsyncpa [#allocation9], 0 }
   0x3   :  { %15 = vsyncpa [#allocation4], 0  ;;  %s669_s24 = smov [#allocation5]   ;;  %s551_s28 = scalar_lea.hbm %s818_s1, 256 }
   0x4   :  { %s31_s25 = sshll.u32 %s669_s24, 4  ;;  %p552_p0 = scmp.ne.s32.totalorder %s818_s1, %s551_s28  ;;  %s32_s25 = int_to_ptr.vmem [resolvable:$true] %s31_s25 }
   0x5   :  { %p555_p1 = scmp.lt.u32.totalorder %s551_s28, %s818_s1 }
   0x7   :  { %p557_p2 = pnand %p555_p1, %p552_p0 }
   0x9   :  { %560 = shalt.err (!%p557_p2)
}
   0xa   :  { %s561_s10 = scalar_lea.vmem %s32_s25, 256  ;;  %p566_p4 = scmp.lt.s32.totalorder %s32_s25, %s32_s25 }
   0xb   :  { %p562_p3 = scmp.ne.s32.totalorder %s32_s25, %s561_s10  ;;  %p567_p5 = scmp.lt.s32.totalorder %s561_s10, %s561_s10 }
   0xd   :  { %p568_p6 = por %p567_p5, %p566_p4 }
   0xf   :  { %p569_p7 = pnand %p568_p6, %p562_p3 }
  0x11   :  { %572 = shalt.err (!%p569_p7)
}
  0x12   :  { %s670_s11 = smov 128   ;;  %s671_s12 = smov 8  }
  0x13   :  { %37 = dma.hbm_to_vmem [thread:$0]  %s818_s1, 256, %s32_s25, [#allocation6], %s670_s11, %s670_s11, %s671_s12  }
  0x14   :  { %s672_s15 = smov [#allocation2]   ;;  %s673_s17 = smov [#allocation7]  }
  0x15   :  { %s22_s16 = sshll.u32 %s672_s15, 4  ;;  %s45_s18 = sshll.u32 %s673_s17, 4  ;;  %s23_s16 = int_to_ptr.vmem [resolvable:$true] %s22_s16  ;;  %s46_s18 = int_to_ptr.vmem [resolvable:$true] %s45_s18 }
  0x16   :  { %s573_s21 = scalar_lea.hbm %s817_s0, 128 }
  0x17   :  { %p574_p8 = scmp.ne.s32.totalorder %s817_s0, %s573_s21  ;;  %p577_p9 = scmp.lt.u32.totalorder %s573_s21, %s817_s0 }
  0x19   :  { %p579_p10 = pnand %p577_p9, %p574_p8 }
  0x1b   :  { %582 = shalt.err (!%p579_p10)
}
  0x1c   :  { %s583_s1 = scalar_lea.vmem %s23_s16, 128  ;;  %p588_p12 = scmp.lt.s32.totalorder %s23_s16, %s23_s16 }
  0x1d   :  { %p584_p11 = scmp.ne.s32.totalorder %s23_s16, %s583_s1  ;;  %p589_p13 = scmp.lt.s32.totalorder %s583_s1, %s583_s1 }
  0x1f   :  { %p590_p0 = por %p589_p13, %p588_p12 }
  0x21   :  { %p591_p1 = pnand %p590_p0, %p584_p11 }
  0x23   :  { %594 = shalt.err (!%p591_p1)
}
  0x24   :  { %25 = dma.hbm_to_vmem [thread:$0]  %s817_s0, 128, %s23_s16, [#allocation3]  }
  0x25   :  { %s595_s30 = scalar_lea.hbm %s820_s3, 2048 }
  0x26   :  { %p596_p2 = scmp.ne.s32.totalorder %s820_s3, %s595_s30  ;;  %p599_p3 = scmp.lt.u32.totalorder %s595_s30, %s820_s3 }
  0x28   :  { %p601_p4 = pnand %p599_p3, %p596_p2 }
  0x2a   :  { %604 = shalt.err (!%p601_p4)
}
  0x2b   :  { %s605_s14 = scalar_lea.vmem %s46_s18, 2048  ;;  %p610_p6 = scmp.lt.s32.totalorder %s46_s18, %s46_s18 }
  0x2c   :  { %p606_p5 = scmp.ne.s32.totalorder %s46_s18, %s605_s14  ;;  %p611_p7 = scmp.lt.s32.totalorder %s605_s14, %s605_s14 }
  0x2e   :  { %p612_p8 = por %p611_p7, %p610_p6 }
  0x30   :  { %p613_p9 = pnand %p612_p8, %p606_p5 }
  0x32   :  { %616 = shalt.err (!%p613_p9)
}
  0x33   :  { %51 = dma.hbm_to_vmem [thread:$0]  %s820_s3, 2048, %s46_s18, [#allocation6], %s670_s11, %s670_s11, %s671_s12  }
  0x34   :  { %s674_s16 = smov [#allocation8]   ;;  %s617_s21 = scalar_lea.hbm %s822_s5, 2048 }
  0x35   :  { %s59_s17 = sshll.u32 %s674_s16, 4  ;;  %p618_p10 = scmp.ne.s32.totalorder %s822_s5, %s617_s21  ;;  %s60_s17 = int_to_ptr.vmem [resolvable:$true] %s59_s17 }
  0x36   :  { %p621_p11 = scmp.lt.u32.totalorder %s617_s21, %s822_s5 }
  0x38   :  { %p623_p12 = pnand %p621_p11, %p618_p10 }
  0x3a   :  { %626 = shalt.err (!%p623_p12)
}
  0x3b   :  { %s627_s1 = scalar_lea.vmem %s60_s17, 2048  ;;  %p632_p0 = scmp.lt.s32.totalorder %s60_s17, %s60_s17 }
  0x3c   :  { %p628_p13 = scmp.ne.s32.totalorder %s60_s17, %s627_s1  ;;  %p633_p1 = scmp.lt.s32.totalorder %s627_s1, %s627_s1 }
  0x3e   :  { %p634_p2 = por %p633_p1, %p632_p0 }
  0x40   :  { %p635_p3 = pnand %p634_p2, %p628_p13 }
  0x42   :  { %638 = shalt.err (!%p635_p3)
}
  0x43   :  { %65 = dma.hbm_to_vmem [thread:$0]  %s822_s5, 2048, %s60_s17, [#allocation9], %s670_s11, %s670_s11, %s671_s12  }
  0x44   :  { %661 = dma.done.wait [#allocation3], 128  }
  0x45   :  { %662 = vsyncadd [#allocation3], 4294967168 }
  0x46   :  { %663 = dma.done.wait [#allocation6], 2304  }
  0x47   :  { %664 = vsyncadd [#allocation6], 4294964992 }
  0x48   :  { %665 = dma.done.wait [#allocation9], 2048  }
  0x49   :  { %666 = vsyncadd [#allocation9], 4294965248  ;;  %v675_v0 = vmov 0.0|0.0   ;;  %vm676_vm0 = vmmov 0   ;;  %v677_v1 = vmov 0.0   ;;  %v81_v2 = vld [vmem:[#allocation5] sm:$0xff] }
  0x4a   :  { %490 = vmatprep.subr.bf16.mxu0 %v675_v0  ;;  %417 = vmatprep.mubr.msk.f32.mxu0 %vm676_vm0, %v677_v1  ;;  %v82_v3 = vld [vmem:[#allocation5 + $0x8] sm:$0xff]  ;;  %v166_v5 = vld [vmem:[#allocation7] sm:$0xff]  ;;  %v167_v6 = vld [vmem:[#allocation7 + $0x8] sm:$0xff]  ;;  %vm90_vm1 = vcmask 130048   ;;  %s678_s28 = smov [#allocation10]  }
  0x4b   :  { %493 = vmatprep.subr.bf16.mxu1 %v675_v0  ;;  %452 = vmatprep.mubr.msk.f32.mxu1 %vm676_vm0, %v677_v1  ;;  %v491_v4 = vpack.c.bf16 %v82_v3, %v81_v2  ;;  %v168_v7 = vld [vmem:[#allocation7 + $0x10] sm:$0xff]  ;;  %v494_v8 = vpack.c.bf16 %v167_v6, %v166_v5  ;;  %v169_v9 = vld [vmem:[#allocation7 + $0x18] sm:$0xff]  ;;  %v80_v10 = vld [vmem:[#allocation2] sm:$0xff]  ;;  %s361_s29 = sshll.u32 %s678_s28, 4  ;;  %s362_s29 = int_to_ptr.vmem [resolvable:$true] %s361_s29 }
  0x4c   :  { %v497_v11 = vpack.c.bf16 %v169_v9, %v168_v7  ;;  %v170_v12 = vld [vmem:[#allocation7 + $0x20] sm:$0xff]  ;;  %v171_v13 = vld [vmem:[#allocation7 + $0x28] sm:$0xff]  ;;  %v172_v15 = vld [vmem:[#allocation7 + $0x30] sm:$0xff]  ;;  %s639_s30 = scalar_lea.vmem %s362_s29, 128  ;;  %p644_p5 = scmp.lt.s32.totalorder %s362_s29, %s362_s29 }
  0x4d   :  { %492 = vmatpush3.bf16.msra.mxu0 %v491_v4  ;;  %495 = vmatpush3.bf16.msra.mxu1 %v494_v8  ;;  %v500_v14 = vpack.c.bf16 %v171_v13, %v170_v12  ;;  %v173_v16 = vld [vmem:[#allocation7 + $0x38] sm:$0xff]  ;;  %v174_v18 = vld [vmem:[#allocation7 + $0x40] sm:$0xff]  ;;  %v175_v19 = vld [vmem:[#allocation7 + $0x48] sm:$0xff]  ;;  %p640_p4 = scmp.ne.s32.totalorder %s362_s29, %s639_s30  ;;  %p645_p6 = scmp.lt.s32.totalorder %s639_s30, %s639_s30 }
  0x4e   :  { %517 = vmatprep.subr.bf16.mxu0 %v675_v0  ;;  %496 = vmatprep.subr.bf16.mxu1 %v675_v0  ;;  %v503_v17 = vpack.c.bf16 %v173_v16, %v172_v15  ;;  %v506_v20 = vpack.c.bf16 %v175_v19, %v174_v18  ;;  %v176_v21 = vld [vmem:[#allocation7 + $0x50] sm:$0xff]  ;;  %v177_v22 = vld [vmem:[#allocation7 + $0x58] sm:$0xff]  ;;  %v178_v24 = vld [vmem:[#allocation7 + $0x60] sm:$0xff] }
  0x4f   :  { %v509_v23 = vpack.c.bf16 %v177_v22, %v176_v21  ;;  %v179_v25 = vld [vmem:[#allocation7 + $0x68] sm:$0xff]  ;;  %v180_v27 = vld [vmem:[#allocation7 + $0x70] sm:$0xff]  ;;  %v181_v28 = vld [vmem:[#allocation7 + $0x78] sm:$0xff]  ;;  %p646_p7 = por %p645_p6, %p644_p5 }
  0x50   :  { %418 = vmatmul.mubr.msk.f32.vlgmr.msra.gmra.mrb[0].mxu0 %vm90_vm1, %v80_v10  ;;  %v512_v26 = vpack.c.bf16 %v179_v25, %v178_v24  ;;  %v515_v29 = vpack.c.bf16 %v181_v28, %v180_v27  ;;  %v261_v30 = vld [vmem:[#allocation8] sm:$0xff]  ;;  %v262_v31 = vld [vmem:[#allocation8 + $0x8] sm:$0xff]  ;;  %v263_v32 = vld [vmem:[#allocation8 + $0x10] sm:$0xff] }
  0x51   :  { %487 = vmatprep.mubr.msk.f32.mxu0 %vm676_vm0, %v677_v1  ;;  %498 = vmatpush3.bf16.msra.mxu1 %v497_v11  ;;  %v518_v33 = vpack.c.bf16 %v262_v31, %v261_v30  ;;  %v264_v34 = vld [vmem:[#allocation8 + $0x18] sm:$0xff]  ;;  %v265_v36 = vld [vmem:[#allocation8 + $0x20] sm:$0xff]  ;;  %v266_v37 = vld [vmem:[#allocation8 + $0x28] sm:$0xff]  ;;  %p647_p8 = pnand %p646_p7, %p640_p4 }
  0x52   :  { %499 = vmatprep.subr.bf16.mxu1 %v675_v0  ;;  %v521_v35 = vpack.c.bf16 %v264_v34, %v263_v32  ;;  %v524_v38 = vpack.c.bf16 %v266_v37, %v265_v36  ;;  %v267_v39 = vld [vmem:[#allocation8 + $0x30] sm:$0xff]  ;;  %v268_v40 = vld [vmem:[#allocation8 + $0x38] sm:$0xff]  ;;  %v269_v42 = vld [vmem:[#allocation8 + $0x40] sm:$0xff] }
  0x53   :  { %519 = vmatpush3.bf16.msra.mxu0 %v518_v33  ;;  %v527_v41 = vpack.c.bf16 %v268_v40, %v267_v39  ;;  %v270_v43 = vld [vmem:[#allocation8 + $0x48] sm:$0xff]  ;;  %v271_v45 = vld [vmem:[#allocation8 + $0x50] sm:$0xff]  ;;  %v272_v46 = vld [vmem:[#allocation8 + $0x58] sm:$0xff] }
  0x54   :  { %520 = vmatprep.subr.bf16.mxu0 %v675_v0  ;;  %v530_v44 = vpack.c.bf16 %v270_v43, %v269_v42  ;;  %v533_v47 = vpack.c.bf16 %v272_v46, %v271_v45  ;;  %v372_v48 = vld [vmem:[%s819_s2] ss:$0 sm:$0xff]  ;;  %v273_v54 = vld [vmem:[#allocation8 + $0x60] sm:$0xff]  ;;  %v275_v57 = vld [vmem:[#allocation8 + $0x70] sm:$0xff] }
  0x55   :  { %501 = vmatpush3.bf16.msra.mxu1 %v500_v14  ;;  %v274_v55 = vld [vmem:[#allocation8 + $0x68] sm:$0xff]  ;;  %v276_v58 = vld [vmem:[#allocation8 + $0x78] sm:$0xff] }
  0x56   :  { %502 = vmatprep.subr.bf16.mxu1 %v675_v0  ;;  %v536_v56 = vpack.c.bf16 %v274_v55, %v273_v54  ;;  %v539_v59 = vpack.c.bf16 %v276_v58, %v275_v57  ;;  %v374_v60 = vld [vmem:[%s821_s4] ss:$0 sm:$0xff] }
  0x57   :  { %522 = vmatpush3.bf16.msra.mxu0 %v521_v35  ;;  %v375_v3 = vld [vmem:[%s823_s6] ss:$0 sm:$0xff] }
  0x58   :  { %523 = vmatprep.subr.bf16.mxu0 %v675_v0 }
  0x59   :  { %504 = vmatpush3.bf16.msra.mxu1 %v503_v17 }
  0x5a   :  { %505 = vmatprep.subr.bf16.mxu1 %v675_v0 }
  0x5b   :  { %525 = vmatpush3.bf16.msra.mxu0 %v524_v38 }
  0x5c   :  { %526 = vmatprep.subr.bf16.mxu0 %v675_v0 }
  0x5d   :  { %507 = vmatpush3.bf16.msra.mxu1 %v506_v20 }
  0x5e   :  { %508 = vmatprep.subr.bf16.mxu1 %v675_v0 }
  0x5f   :  { %528 = vmatpush3.bf16.msra.mxu0 %v527_v41 }
  0x60   :  { %529 = vmatprep.subr.bf16.mxu0 %v675_v0 }
  0x61   :  { %510 = vmatpush3.bf16.msra.mxu1 %v509_v23 }
  0x62   :  { %511 = vmatprep.subr.bf16.mxu1 %v675_v0 }
  0x63   :  { %531 = vmatpush3.bf16.msra.mxu0 %v530_v44 }
  0x64   :  { %532 = vmatprep.subr.bf16.mxu0 %v675_v0 }
  0x65   :  { %513 = vmatpush3.bf16.msra.mxu1 %v512_v26 }
  0x66   :  { %514 = vmatprep.subr.bf16.mxu1 %v675_v0 }
  0x67   :  { %534 = vmatpush3.bf16.msra.mxu0 %v533_v47 }
  0x68   :  { %535 = vmatprep.subr.bf16.mxu0 %v675_v0 }
  0x69   :  { %516 = vmatpush3.bf16.msra.mxu1 %v515_v29 }
  0x6b   :  { %537 = vmatpush3.bf16.msra.mxu0 %v536_v56 }
  0x6c   :  { %538 = vmatprep.subr.bf16.mxu0 %v675_v0 }
  0x6f   :  { %540 = vmatpush3.bf16.msra.mxu0 %v539_v59 }
 0x123   :  { %v160_v49 = vpop.f32.mrb[0].mxu0 }
 0x124   :  { %v161_v50 = vadd.f32 %v372_v48, %v160_v49  ;;  %v419_v51 = vpop.f32.mrb[1].mxu0 }
 0x126   :  { %v164_v52 = vmul.f32 0.01, %v161_v50 }
 0x128   :  { %v165_v53 = vmax.f32 %v161_v50, %v164_v52 }
 0x12a   :  { %453 = vmatmul.mubr.f32.vlgmr.msra.gmra.mrb[0].mxu1 %v165_v53 }
 0x1fd   :  { %v255_v61 = vpop.f32.mrb[0].mxu1 }
 0x1fe   :  { %v256_v62 = vadd.f32 %v374_v60, %v255_v61  ;;  %v454_v63 = vpop.f32.mrb[1].mxu1 }
 0x200   :  { %v259_v1 = vmul.f32 0.01, %v256_v62 }
 0x202   :  { %v260_v2 = vmax.f32 %v256_v62, %v259_v1 }
 0x204   :  { %488 = vmatmul.mubr.f32.vlgmr.msra.gmra.mrb[2].mxu0 %v260_v2 }
 0x2d7   :  { %v350_v0 = vpop.f32.mrb[2].mxu0 }
 0x2d8   :  { %v351_v4 = vadd.f32 %v375_v3, %v350_v0  ;;  %v489_v5 = vpop.f32.mrb[3].mxu0 }
 0x2da   :  { %354 = vst [vmem:[#allocation10] sm:$0xff] %v351_v4 }
 0x2db   :  { %650 = shalt.err (!%p647_p8)
}
 0x2dc   :  { %s651_s9 = scalar_lea.hbm %s824_s7, 128 }
 0x2dd   :  { %p652_p9 = scmp.ne.s32.totalorder %s824_s7, %s651_s9  ;;  %p655_p10 = scmp.lt.u32.totalorder %s651_s9, %s824_s7 }
 0x2df   :  { %p657_p11 = pnand %p655_p10, %p652_p9 }
 0x2e1   :  { %660 = shalt.err (!%p657_p11)
}
 0x2e2   :  { %364 = dma.vmem_to_hbm [thread:$0]  %s362_s29, 128, %s824_s7, [#allocation4]  }
 0x2e3   :  { %667 = dma.done.wait [#allocation4], 128  }
 0x2e4   :  { %668 = vsyncadd [#allocation4], 4294967168 }
 0x2e5   :  { %368 = vsyncpa [#allocation3], 1 }
 0x2e6   :  { %369 = vsyncpa [#allocation6], 1 }
 0x2e7   :  { %370 = vsyncpa [#allocation9], 1 }
 0x2e8   :  { %371 = vsyncpa [#allocation4], 1 }

</bundles_post_ra>
